<compile_context>
chip_gen: v5e
topology: v5e:2x2
jax: 0.10.0
libtpu: 0.0.40
codegen_flags: <defaults>
</compile_context>

<pallas_src>
import jax
import jax.numpy as jnp
from jax.experimental import pallas as pl
from jax.experimental.pallas import tpu as pltpu


def _round_up(x, m):
    return ((x + m - 1) // m) * m


def _cdiv(a, b):
    return (a + b - 1) // b


def _usable_vmem_bytes():
    """Generation-aware scoped-VMEM budget (~48 MiB on v7x, ~96 MiB on v5e/v6e)."""
    try:
        cap = int(pltpu.get_tpu_info().vmem_capacity_bytes)
    except Exception:
        cap = 64 * 1024 * 1024          # conservative (v7x-sized) fallback
    return max((cap * 3) // 4, 32 * 1024 * 1024)


# ---------------------------------------------------------------------------
# Kernels
# ---------------------------------------------------------------------------
def _linear_fullk_kernel(x_ref, w_ref, b_ref, o_ref):
    """Full-K path: one MXU pass per row tile, no scratch, no epilogue copy."""
    acc = jnp.dot(x_ref[...], w_ref[...], preferred_element_type=jnp.float32)
    o_ref[...] = (acc + b_ref[...]).astype(o_ref.dtype)


def _make_ktiled_kernel(tk, w_resident):
    """K-tiled path with f32 accumulator; W either resident (sliced) or streamed."""

    def kernel(x_ref, w_ref, b_ref, o_ref, acc_ref):
        k = pl.program_id(1)

        @pl.when(k == 0)
        def _():
            acc_ref[...] = jnp.zeros_like(acc_ref)

        if w_resident:
            start = pl.multiple_of(k * tk, 128)
            w_blk = w_ref[pl.ds(start, tk), :]
        else:
            w_blk = w_ref[...]

        acc_ref[...] += jnp.dot(x_ref[...], w_blk,
                                preferred_element_type=jnp.float32)

        @pl.when(k == pl.num_programs(1) - 1)
        def _():
            o_ref[...] = (acc_ref[...] + b_ref[...]).astype(o_ref.dtype)

    return kernel


# ---------------------------------------------------------------------------
# Wrapper
# ---------------------------------------------------------------------------
def linear_forward(x, w, b, *, tm=2048, tk=4096,
                   compute_dtype=jnp.bfloat16, out_dtype=None):
    """y = x @ w + b  (w stored as (in_features, out_features))."""
    batch, in_features = x.shape
    in_features_w, out_features = w.shape
    assert in_features == in_features_w
    out_dtype = out_dtype or x.dtype

    in_b = jnp.dtype(compute_dtype).itemsize
    store_dtype = compute_dtype                 # lane-dense, low-amplification store
    store_b = jnp.dtype(store_dtype).itemsize
    sub = 16 if in_b < 4 else 8                 # bf16 packs 2 rows per sublane

    n_pad = _round_up(out_features, 128)        # lane-dense output / W
    k128 = _round_up(in_features, 128)          # lane-dense K

    usable = _usable_vmem_bytes()

    # ---- batch (M) tiling --------------------------------------------------
    m_sub = _round_up(batch, sub)
    tm_eff = min(tm, m_sub)
    if m_sub >= 512:
        # Keep at least 2 row tiles so the "parallel" M axis can shard across
        # both TensorCores on dual-TC chips (v7x).
        tm_eff = min(tm_eff, _round_up(_cdiv(m_sub, 2), 256))
    tm_eff = _round_up(tm_eff, sub)
    m_pad = _round_up(batch, tm_eff)
    grid_m = m_pad // tm_eff

    # ---- K tiling ------------------------------------------------------------
    tk_req = _round_up(min(max(tk, 128), k128), 128)
    w_res_bytes = 2 * k128 * n_pad * in_b                 # resident W (2x budget)
    out_tiles_bytes = 2 * tm_eff * n_pad * store_b        # output tiles
    bias_bytes = 2 * n_pad * 4
    fullk_bytes = (2 * tm_eff * k128 * in_b + w_res_bytes
                   + out_tiles_bytes + bias_bytes)

    full_k = (tk_req >= k128) and (fullk_bytes <= usable)

    if full_k:
        tk_eff, grid_k, k_pad = k128, 1, k128
        w_resident = True
        vmem_needed = fullk_bytes
    else:
        acc_bytes = tm_eff * n_pad * 4
        w_resident = w_res_bytes <= usable // 4
        fixed = (out_tiles_bytes + bias_bytes + acc_bytes
                 + (w_res_bytes if w_resident else 0))
        per_k_col = 2 * tm_eff * in_b + (0 if w_resident else 2 * n_pad * in_b)
        tk_fit = max((usable - fixed) // (per_k_col * 128), 1) * 128
        tk_cap = max(min(tk_req, tk_fit), 128)
        nsplit = _cdiv(k128, tk_cap)
        tk_eff = _round_up(_cdiv(k128, nsplit), 128)       # even K split
        grid_k = _cdiv(k128, tk_eff)
        k_pad = grid_k * tk_eff
        vmem_needed = fixed + per_k_col * tk_eff

    # ---- cast + (only if needed) zero-pad; cast first so pad moves bf16 bytes
    # and the convert+pad fuse into one HBM pass under jit. -------------------
    xc = x if x.dtype == compute_dtype else x.astype(compute_dtype)
    if (m_pad, k_pad) != (batch, in_features):
        xc = jnp.pad(xc, ((0, m_pad - batch), (0, k_pad - in_features)))
    wc = w.astype(compute_dtype)
    if (k_pad, n_pad) != (in_features, out_features):
        wc = jnp.pad(wc, ((0, k_pad - in_features), (0, n_pad - out_features)))
    b2 = jnp.pad(b.reshape(1, out_features).astype(jnp.float32),
                 ((0, 0), (0, n_pad - out_features)))

    vmem_limit = min(max((int(vmem_needed) * 5) // 4, 32 * 1024 * 1024), usable)

    if full_k:
        out_padded = pl.pallas_call(
            _linear_fullk_kernel,
            out_shape=jax.ShapeDtypeStruct((m_pad, n_pad), store_dtype),
            grid_spec=pltpu.PrefetchScalarGridSpec(
                num_scalar_prefetch=0,
                grid=(grid_m,),
                in_specs=[
                    pl.BlockSpec((tm_eff, k_pad), lambda i: (i, 0)),
                    pl.BlockSpec((k_pad, n_pad), lambda i: (0, 0)),   # W resident
                    pl.BlockSpec((1, n_pad), lambda i: (0, 0)),       # bias resident
                ],
                out_specs=pl.BlockSpec((tm_eff, n_pad), lambda i: (i, 0)),
            ),
            compiler_params=pltpu.CompilerParams(
                dimension_semantics=("parallel",),
                vmem_limit_bytes=int(vmem_limit),
            ),
        )(xc, wc, b2)
    else:
        if w_resident:
            w_spec = pl.BlockSpec((k_pad, n_pad), lambda i, k: (0, 0))
        else:
            w_spec = pl.BlockSpec((tk_eff, n_pad), lambda i, k: (k, 0))
        out_padded = pl.pallas_call(
            _make_ktiled_kernel(tk_eff, w_resident),
            out_shape=jax.ShapeDtypeStruct((m_pad, n_pad), store_dtype),
            grid_spec=pltpu.PrefetchScalarGridSpec(
                num_scalar_prefetch=0,
                grid=(grid_m, grid_k),
                in_specs=[
                    pl.BlockSpec((tm_eff, tk_eff), lambda i, k: (i, k)),
                    w_spec,
                    pl.BlockSpec((1, n_pad), lambda i, k: (0, 0)),
                ],
                out_specs=pl.BlockSpec((tm_eff, n_pad), lambda i, k: (i, 0)),
                scratch_shapes=[pltpu.VMEM((tm_eff, n_pad), jnp.float32)],
            ),
            compiler_params=pltpu.CompilerParams(
                dimension_semantics=("parallel", "arbitrary"),
                vmem_limit_bytes=int(vmem_limit),
            ),
        )(xc, wc, b2)

    out = out_padded[:batch, :out_features]
    return out if out.dtype == out_dtype else out.astype(out_dtype)


# ---------------------------------------------------------------------------
# Module analogue
# ---------------------------------------------------------------------------
class PallasLinearModule:
    """JAX/Pallas analogue of Module: forward(X) = net(X), net = Linear(in, out).

    TODO(synk): loss/plot/training_step/ProgressBoard are host-side training
    utilities with no Pallas equivalent; only forward() is implemented.
    """

    def __init__(self, in_features, out_features=1, key=None):
        if key is None:
            key = jax.random.PRNGKey(0)
        kw, kb = jax.random.split(key)
        # W stored pre-transposed as (in_features, out_features) so forward is
        # y = X @ W + b, matching PyTorch's y = X @ W^T + b.
        self.w = jax.random.normal(kw, (in_features, out_features), jnp.float32) * 0.01
        self.b = jax.random.normal(kb, (out_features,), jnp.float32) * 0.01
        # jit so wrapper-side cast/pad/slice fuse into single HBM passes.
        self._fwd = jax.jit(linear_forward)

    def forward(self, X):
        return self._fwd(X, self.w, self.b)

    __call__ = forward


def _reference(x, w, b):
    """Same numerics as the kernel: bf16 inputs, f32 accum, bf16 store."""
    xc = x.astype(jnp.bfloat16).astype(jnp.float32)
    wc = w.astype(jnp.bfloat16).astype(jnp.float32)
    y = xc @ wc + b.reshape(1, -1)
    return y.astype(jnp.bfloat16).astype(jnp.float32)


if __name__ == "__main__":
    key = jax.random.PRNGKey(0)
    k_x, k_p, k_x2, k_p2 = jax.random.split(key, 4)

    # --- d2l linear-regression shape: full-K (no K grid) path ---------------
    batch, in_features, out_features = 8, 32, 1
    X = jax.random.normal(k_x, (batch, in_features), jnp.float32)
    model = PallasLinearModule(in_features, out_features, key=k_p)
    y = jax.block_until_ready(model(X))
    y_ref = _reference(X, model.w, model.b)
    assert y.shape == (batch, out_features)
    assert jnp.allclose(y, y_ref, atol=1e-2, rtol=1e-2)

    # --- small shape forcing the K-tiled path (resident W, f32 accumulator) --
    b2, k2, n2 = 64, 384, 8
    X2 = jax.random.normal(k_x2, (b2, k2), jnp.float32)
    W2 = jax.random.normal(k_p2, (k2, n2), jnp.float32) * 0.01
    B2 = jnp.zeros((n2,), jnp.float32)
    y2 = jax.block_until_ready(linear_forward(X2, W2, B2, tk=128))
    y2_ref = _reference(X2, W2, B2)
    assert y2.shape == (b2, n2)
    assert jnp.allclose(y2, y2_ref, atol=1e-2, rtol=1e-2)

    print("KERNEL_OK")
</pallas_src>

<mosaic_0001>
module attributes {stable_mosaic.version = 11 : i64} {
  func.func @_linear_fullk_kernel(%arg0: i32, %arg1: memref<16x128xbf16, #tpu.memory_space<vmem>>, %arg2: memref<128x128xbf16, #tpu.memory_space<vmem>>, %arg3: memref<1x128xf32, #tpu.memory_space<vmem>>, %arg4: memref<16x128xbf16, #tpu.memory_space<vmem>>) attributes {dimension_semantics = [#tpu.dimension_semantics<parallel>], iteration_bounds = array<i64: 1>, scalar_prefetch = 0 : i64, scratch_operands = 0 : i64, tpu.core_type = #tpu.core_type<tc>, window_params = [{transform_indices = @transform_0, window_bounds = array<i64: 16, 128>}, {pipeline_mode = #tpu.pipeline_mode<synchronous>, transform_indices = @transform_1, window_bounds = array<i64: 128, 128>}, {pipeline_mode = #tpu.pipeline_mode<synchronous>, transform_indices = @transform_2, window_bounds = array<i64: 1, 128>}, {transform_indices = @transform_3, window_bounds = array<i64: 16, 128>}]} {
    %c0 = arith.constant 0 : index
    %c0_0 = arith.constant 0 : index
    %0 = vector.load %arg1[%c0, %c0_0] : memref<16x128xbf16, #tpu.memory_space<vmem>>, vector<16x128xbf16>
    %c0_1 = arith.constant 0 : index
    %c0_2 = arith.constant 0 : index
    %1 = vector.load %arg2[%c0_1, %c0_2] : memref<128x128xbf16, #tpu.memory_space<vmem>>, vector<128x128xbf16>
    %cst = arith.constant dense<0.000000e+00> : vector<16x128xf32>
    %2 = tpu.matmul %0, %1, %cst {dimension_numbers = #tpu.dot_dimension_numbers<[1], [0], [0], [1], [0, 0, 1, 1], [], []>} : vector<16x128xbf16>, vector<128x128xbf16>, vector<16x128xf32> -> vector<16x128xf32>
    %c0_3 = arith.constant 0 : index
    %c0_4 = arith.constant 0 : index
    %3 = vector.load %arg3[%c0_3, %c0_4] : memref<1x128xf32, #tpu.memory_space<vmem>>, vector<1x128xf32>
    %4 = vector.broadcast %3 : vector<1x128xf32> to vector<16x128xf32>
    %5 = arith.addf %2, %4 : vector<16x128xf32>
    %6 = arith.truncf %5 : vector<16x128xf32> to vector<16x128xbf16>
    %c0_5 = arith.constant 0 : index
    %c0_6 = arith.constant 0 : index
    %7 = vector.load %arg4[%c0_5, %c0_6] : memref<16x128xbf16, #tpu.memory_space<vmem>>, vector<16x128xbf16>
    tpu.vector_store %arg4[%c0_5, %c0_6], %6 {strides = array<i32>} : memref<16x128xbf16, #tpu.memory_space<vmem>>, vector<16x128xbf16>,
    return
  }
  func.func @transform_0(%arg0: i32) -> (i32, i32) {
    %c0_i32 = arith.constant 0 : i32
    %c0_i32_0 = arith.constant 0 : i32
    return %arg0, %c0_i32 : i32, i32
  }
  func.func @transform_1(%arg0: i32) -> (i32, i32) {
    %c0_i32 = arith.constant 0 : i32
    %c0_i32_0 = arith.constant 0 : i32
    %c0_i32_1 = arith.constant 0 : i32
    return %c0_i32, %c0_i32_0 : i32, i32
  }
  func.func @transform_2(%arg0: i32) -> (i32, i32) {
    %c0_i32 = arith.constant 0 : i32
    %c0_i32_0 = arith.constant 0 : i32
    %c0_i32_1 = arith.constant 0 : i32
    return %c0_i32, %c0_i32_0 : i32, i32
  }
  func.func @transform_3(%arg0: i32) -> (i32, i32) {
    %c0_i32 = arith.constant 0 : i32
    %c0_i32_0 = arith.constant 0 : i32
    return %arg0, %c0_i32 : i32, i32
  }
}

</mosaic_0001>

<bundles_post_ra>
// kernel: linear_forward.1
= control target key start
LH: loop header
LB: loop body
LE: loop exit
PB: predicated region body
PF: predicated region fallthrough
CT: control target
= control target key end

     0   :  { %s216_s1 = inlined_call_operand.vmem [shape: bf16[128,128], index: 1, kind: input, shape index: {}]   ;;  %s217_s2 = inlined_call_operand.vmem [shape: f32[1,128], index: 2, kind: input, shape index: {}]   ;;  %s218_s0 = inlined_call_operand.vmem [shape: bf16[16,128], index: 0, kind: input, shape index: {}]   ;;  %s219_s3 = inlined_call_operand.vmem [shape: bf16[16,128], index: 3, kind: output, shape index: {}]  }
   0x1   :  { %v156_v0 = vld [vmem:[%s216_s1 + $0x38] sm:$0xff]  ;;  %v155_v1 = vld [vmem:[%s216_s1 + $0x30] sm:$0xff]  ;;  %v154_v2 = vld [vmem:[%s216_s1 + $0x28] sm:$0xff] }
   0x2   :  { %90 = vmatpush.bf16.msra.mxu0 %v156_v0  ;;  %v153_v3 = vld [vmem:[%s216_s1 + $0x20] sm:$0xff]  ;;  %v152_v4 = vld [vmem:[%s216_s1 + $0x18] sm:$0xff]  ;;  %v151_v5 = vld [vmem:[%s216_s1 + $0x10] sm:$0xff] }
   0x3   :  { %v150_v6 = vld [vmem:[%s216_s1 + $0x8] sm:$0xff]  ;;  %v149_v7 = vld [vmem:[%s216_s1] sm:$0xff] }
   0x4   :  { %v148_v8 = vld [vmem:[%s218_s0] sm:$0xff] }
   0x5   :  { %v162_v10 = vld [vmem:[%s217_s2] ss:$0 sm:$0xff] }
   0x6   :  { %91 = vmatpush.bf16.msra.mxu0 %v155_v1 }
   0xa   :  { %92 = vmatpush.bf16.msra.mxu0 %v154_v2 }
   0xe   :  { %93 = vmatpush.bf16.msra.mxu0 %v153_v3 }
  0x12   :  { %94 = vmatpush.bf16.msra.mxu0 %v152_v4 }
  0x16   :  { %95 = vmatpush.bf16.msra.mxu0 %v151_v5 }
  0x1a   :  { %96 = vmatpush.bf16.msra.mxu0 %v150_v6 }
  0x1e   :  { %97 = vmatpush.bf16.msra.mxu0 %v149_v7 }
  0x21   :  { %98 = vmatmul.bf16.vlgmr.msra.gmra.mxu0 %v148_v8 }
  0x9e   :  { %v99_v9 = vpop.f32.mrf.mxu0 }
  0x9f   :  { %v100_v12 = vadd.f32 %v162_v10, %v99_v9 }
  0xa6   :  { %v101_v11 = vpop.f32.mrf.mxu0 }
  0xa7   :  { %v102_v13 = vadd.f32 %v162_v10, %v101_v11 }
  0xa9   :  { %v160_v14 = vpack.c.bf16 %v102_v13, %v100_v12 }
  0xab   :  { %161 = vst [vmem:[%s219_s3] sm:$0xff] %v160_v14  }

</bundles_post_ra>
